<compile_context>
chip_gen: v7x
topology: tpu7x:2x2x1
jax: 0.10.0
libtpu: 0.0.40
codegen_flags: <defaults>
</compile_context>

<pallas_src>
import functools

import jax
import jax.numpy as jnp
from jax.experimental import pallas as pl
from jax.experimental.pallas import tpu as pltpu


def _round_up(x, m):
    return -(-x // m) * m


def _budgets():
    """Generation-aware block / VMEM budgets."""
    try:
        vmem_cap = pltpu.get_tpu_info().vmem_capacity_bytes
    except Exception:  # non-TPU / interpret / unknown: be conservative (v7x-like)
        vmem_cap = 64 * 1024 * 1024
    if vmem_cap >= 100 * 1024 * 1024:       # v5e / v6e (128 MiB VMEM)
        return {"target_block": 8 * 1024 * 1024,
                "vmem_limit": 96 * 1024 * 1024,
                "fused_max": 12 * 1024 * 1024}
    else:                                    # v7x (64 MiB VMEM)
        return {"target_block": 6 * 1024 * 1024,
                "vmem_limit": 48 * 1024 * 1024,
                "fused_max": 6 * 1024 * 1024}


def _hw_tiling(hw, c_pad, itemsize, target_block_bytes, requested=None):
    """Pick (hw_tile, hw_padded): hw_tile is a multiple of 128, divides
    hw_padded, and targets ~target_block_bytes of VMEM per (c_pad, hw_tile)
    block.  No hard lane cap; padding (if any) is bounded by tile balancing."""
    if requested is not None:
        if requested <= 0 or requested % 128 != 0:
            raise ValueError(f"hw_tile={requested} must be a positive multiple of 128")
        return requested, _round_up(hw, requested)
    lanes = max(128, (target_block_bytes // max(1, c_pad * itemsize)) // 128 * 128)
    hw128 = _round_up(hw, 128)
    tile = min(lanes, hw128)
    if hw % tile == 0:
        return tile, hw
    if hw % 128 == 0:
        # Prefer an exact divisor of HW (no pad copy) while staying within 2x
        # of the byte target (avoids the old "collapse to 128 lanes" cliff).
        t = tile
        while t >= max(128, tile // 2):
            if hw % t == 0:
                return t, hw
            t -= 128
    # Pad: balance tiles so the padded tail stays small.
    num_t = -(-hw128 // tile)
    tile = _round_up(-(-hw128 // num_t), 128)
    return tile, tile * num_t


# ----------------------------------------------------------------------------
# Two-pass path, pass 1: per-channel spatial sums (GAP numerator), f32.
# Grid (B, n_split, t_per); the resident (C, 1) accumulator is per (b, split).
# ----------------------------------------------------------------------------
def _pool_sum_kernel(x_ref, sum_ref):
    @pl.when(pl.program_id(2) == 0)
    def _init():
        sum_ref[...] = jnp.zeros_like(sum_ref)

    sum_ref[...] += jnp.sum(x_ref[...], axis=-1, keepdims=True, dtype=jnp.float32)


# ----------------------------------------------------------------------------
# Two-pass path, pass 2: per-pixel sSE gate + precomputed channel gate, apply.
# ----------------------------------------------------------------------------
def _scse_apply_kernel(x_ref, cgate_ref, ws_ref, bs_ref, o_ref, *, use_mxu, precision):
    x = x_ref[...]                                            # (C, HW_TILE), x.dtype
    if use_mxu:
        # (1, C) @ (C, HW_TILE) on the MXU, f32 accumulation.
        s_logit = jnp.dot(ws_ref[...], x, preferred_element_type=jnp.float32,
                          precision=precision)
    else:
        # Tiny-C fallback: VPU multiply + cross-sublane reduce (f32 acc).
        s_logit = jnp.sum(ws_ref[...] * x, axis=0, keepdims=True, dtype=jnp.float32)
    s = jax.nn.sigmoid(s_logit + bs_ref[...])                 # (1, HW_TILE) f32 (EUP)
    gate = cgate_ref[...] + s.astype(x.dtype)                 # (C, HW_TILE), x.dtype
    o_ref[...] = x * gate


# ----------------------------------------------------------------------------
# Fused single-read path: whole (C, HW) image resident in VMEM.
# ----------------------------------------------------------------------------
def _scse_fused_kernel(x_ref, w1t_ref, b1_ref, w2_ref, b2_ref, ws_ref, bs_ref,
                       o_ref, *, inv_hw, use_mxu, precision):
    x = x_ref[...]                                            # (C, HW), x.dtype

    # ---- cSE: global average pool + tiny 2-layer MLP (all f32, off hot path)
    mean = jnp.sum(x, axis=-1, keepdims=True, dtype=jnp.float32) * inv_hw   # (C, 1)
    h = jnp.sum(w1t_ref[...] * mean, axis=0, keepdims=True)                 # (1, Cr)
    h = jnp.clip(h + b1_ref[...], 0.0, 6.0)                                 # ReLU6
    g = jnp.sum(w2_ref[...] * h, axis=-1, keepdims=True) + b2_ref[...]      # (C, 1)
    cg = jax.nn.sigmoid(g).astype(x.dtype)                                  # (C, 1)

    # ---- sSE: per-pixel 1x1 conv C -> 1
    if use_mxu:
        s_logit = jnp.dot(ws_ref[...], x, preferred_element_type=jnp.float32,
                          precision=precision)                              # (1, HW)
    else:
        s_logit = jnp.sum(ws_ref[...] * x, axis=0, keepdims=True, dtype=jnp.float32)
    s = jax.nn.sigmoid(s_logit + bs_ref[...])                               # (1, HW) f32

    o_ref[...] = x * (cg + s.astype(x.dtype))


def scse_forward(x_nchw, ws, bs, w1, b1, w2, b2, *, hw_tile=None, force_two_pass=False):
    """scSE forward.

    x_nchw: (B, C, H, W)
    ws: (C,), bs: ()          -- sSE 1x1 conv (C -> 1) weight / bias
    w1: (Cr, C), b1: (Cr,)    -- cSE pointwise_1
    w2: (C, Cr), b2: (C,)     -- cSE pointwise_2
    """
    B, C, H, W = x_nchw.shape
    HW = H * W
    x = x_nchw.reshape(B, C, HW)
    itemsize = x.dtype.itemsize
    budgets = _budgets()

    use_mxu = C >= 8
    # Full-f32 MXU passes for f32 inputs (matches the reference closely); clean
    # single-pass bf16 for bf16 inputs.
    precision = jax.lax.Precision.HIGHEST if x.dtype == jnp.float32 else None
    # sSE weight layout per branch, pre-cast to x.dtype (no per-tile casts).
    ws_x = (ws.reshape(1, C) if use_mxu else ws.reshape(C, 1)).astype(x.dtype)
    bs_f = jnp.asarray(bs, jnp.float32).reshape(1, 1)

    # VMEM footprint uses the sublane-padded channel count.
    packing = max(1, 4 // itemsize)
    c_pad = _round_up(C, 8 * packing)
    slab_vmem_bytes = c_pad * HW * itemsize

    # ---------------- fused single-read path ---------------------------------
    if (not force_two_pass) and slab_vmem_bytes <= budgets["fused_max"]:
        w1t_f = jnp.asarray(w1, jnp.float32).T                 # (C, Cr)
        b1_f = jnp.asarray(b1, jnp.float32).reshape(1, -1)     # (1, Cr)
        w2_f = jnp.asarray(w2, jnp.float32)                    # (C, Cr)
        b2_f = jnp.asarray(b2, jnp.float32).reshape(C, 1)      # (C, 1)
        kernel = functools.partial(_scse_fused_kernel, inv_hw=1.0 / HW,
                                   use_mxu=use_mxu, precision=precision)
        out = pl.pallas_call(
            kernel,
            out_shape=jax.ShapeDtypeStruct((B, C, HW), x.dtype),
            grid_spec=pltpu.PrefetchScalarGridSpec(
                num_scalar_prefetch=0,
                grid=(B,),
                in_specs=[
                    pl.BlockSpec((pl.Squeezed(), C, HW), lambda b: (b, 0, 0)),  # x
                    pl.BlockSpec(w1t_f.shape, lambda b: (0, 0)),
                    pl.BlockSpec(b1_f.shape, lambda b: (0, 0)),
                    pl.BlockSpec(w2_f.shape, lambda b: (0, 0)),
                    pl.BlockSpec(b2_f.shape, lambda b: (0, 0)),
                    pl.BlockSpec(ws_x.shape, lambda b: (0, 0)),
                    pl.BlockSpec(bs_f.shape, lambda b: (0, 0)),
                ],
                out_specs=pl.BlockSpec((pl.Squeezed(), C, HW), lambda b: (b, 0, 0)),
            ),
            compiler_params=pltpu.CompilerParams(
                dimension_semantics=("parallel",),
                vmem_limit_bytes=budgets["vmem_limit"]),
        )(x, w1t_f, b1_f, w2_f, b2_f, ws_x, bs_f)
        return out.reshape(B, C, H, W)

    # ---------------- two-pass streaming path ---------------------------------
    hw_t, HWp = _hw_tiling(HW, c_pad, itemsize, budgets["target_block"], hw_tile)
    x_p = x if HWp == HW else jnp.pad(x, ((0, 0), (0, 0), (0, HWp - HW)))
    num_t = HWp // hw_t
    # Split the reduction axis in two so both v7x TensorCores get work at B=1
    # (harmless on single-TC v5e/v6e).
    n_split = 2 if (num_t >= 2 and num_t % 2 == 0) else 1
    t_per = num_t // n_split

    sums = pl.pallas_call(
        _pool_sum_kernel,
        out_shape=jax.ShapeDtypeStruct((B, n_split, C, 1), jnp.float32),
        grid_spec=pltpu.PrefetchScalarGridSpec(
            num_scalar_prefetch=0,
            grid=(B, n_split, t_per),
            in_specs=[
                pl.BlockSpec((pl.Squeezed(), C, hw_t),
                             lambda b, s, t, tp=t_per: (b, 0, s * tp + t)),
            ],
            out_specs=pl.BlockSpec((pl.Squeezed(), pl.Squeezed(), C, 1),
                                   lambda b, s, t: (b, s, 0, 0)),
        ),
        compiler_params=pltpu.CompilerParams(
            dimension_semantics=("parallel", "parallel", "arbitrary"),
            vmem_limit_bytes=budgets["vmem_limit"]),
    )(x_p)

    # Tiny per-image excitation MLP (O(B*C*Cr); plain XLA, off the hot path).
    mean = jnp.sum(sums, axis=1)[..., 0] * jnp.float32(1.0 / HW)            # (B, C)
    w1f, b1f = jnp.asarray(w1, jnp.float32), jnp.asarray(b1, jnp.float32)
    w2f, b2f = jnp.asarray(w2, jnp.float32), jnp.asarray(b2, jnp.float32)
    h = jnp.clip(jnp.dot(mean, w1f.T, precision="highest") + b1f, 0.0, 6.0)  # ReLU6
    cgate = jax.nn.sigmoid(jnp.dot(h, w2f.T, precision="highest") + b2f)     # (B, C)
    cgate = cgate[:, :, None].astype(x.dtype)                                # (B, C, 1)

    apply_kernel = functools.partial(_scse_apply_kernel, use_mxu=use_mxu,
                                     precision=precision)
    out = pl.pallas_call(
        apply_kernel,
        out_shape=jax.ShapeDtypeStruct((B, C, HWp), x.dtype),
        grid_spec=pltpu.PrefetchScalarGridSpec(
            num_scalar_prefetch=0,
            grid=(B, num_t),
            in_specs=[
                pl.BlockSpec((pl.Squeezed(), C, hw_t), lambda b, t: (b, 0, t)),  # x
                pl.BlockSpec((pl.Squeezed(), C, 1), lambda b, t: (b, 0, 0)),     # cgate
                pl.BlockSpec(ws_x.shape, lambda b, t: (0, 0)),                   # sSE w
                pl.BlockSpec(bs_f.shape, lambda b, t: (0, 0)),                   # sSE b
            ],
            out_specs=pl.BlockSpec((pl.Squeezed(), C, hw_t), lambda b, t: (b, 0, t)),
        ),
        compiler_params=pltpu.CompilerParams(
            dimension_semantics=("parallel", "parallel"),
            vmem_limit_bytes=budgets["vmem_limit"]),
    )(x_p, cgate, ws_x, bs_f)

    if HWp != HW:
        out = out[:, :, :HW]
    return out.reshape(B, C, H, W)


# ----------------------------------------------------------------------------
# Pure-JAX reference matching the PyTorch scSE forward.
# ----------------------------------------------------------------------------
def _reference(x, ws, bs, w1, b1, w2, b2):
    xf = x.astype(jnp.float32)
    # sSE
    s_logit = jnp.einsum("bchw,c->bhw", xf, ws.astype(jnp.float32),
                         precision="highest") + bs
    sse = xf * jax.nn.sigmoid(s_logit)[:, None, :, :]
    # cSE
    m = jnp.mean(xf, axis=(2, 3))
    h = jnp.clip(jnp.dot(m, w1.astype(jnp.float32).T, precision="highest")
                 + b1.astype(jnp.float32), 0.0, 6.0)
    g = jax.nn.sigmoid(jnp.dot(h, w2.astype(jnp.float32).T, precision="highest")
                       + b2.astype(jnp.float32))
    cse = xf * g[:, :, None, None]
    return (sse + cse).astype(x.dtype)


if __name__ == "__main__":
    def run_case(B, C, H, W, hw_tile, force_two_pass, tol, key):
        Cr = 1 if C // 2 == 0 else C // 2
        ks = jax.random.split(key, 7)
        x = jax.random.normal(ks[0], (B, C, H, W), dtype=jnp.float32)
        ws = jax.random.normal(ks[1], (C,), dtype=jnp.float32) * 0.5
        bs = jax.random.normal(ks[2], (), dtype=jnp.float32) * 0.1
        w1 = jax.random.normal(ks[3], (Cr, C), dtype=jnp.float32) * 0.5
        b1 = jax.random.normal(ks[4], (Cr,), dtype=jnp.float32) * 0.1
        w2 = jax.random.normal(ks[5], (C, Cr), dtype=jnp.float32) * 0.5
        b2 = jax.random.normal(ks[6], (C,), dtype=jnp.float32) * 0.1

        fn = jax.jit(functools.partial(scse_forward, hw_tile=hw_tile,
                                       force_two_pass=force_two_pass))
        out = jax.block_until_ready(fn(x, ws, bs, w1, b1, w2, b2))
        ref = _reference(x, ws, bs, w1, b1, w2, b2)

        assert out.shape == x.shape and out.dtype == x.dtype
        err = jnp.max(jnp.abs(out.astype(jnp.float32) - ref.astype(jnp.float32)))
        denom = jnp.max(jnp.abs(ref.astype(jnp.float32))) + 1.0
        assert float(err) <= tol * float(denom), (
            f"mismatch vs reference: max abs err {float(err)} "
            f"(B={B}, C={C}, H={H}, W={W}, hw_tile={hw_tile}, "
            f"two_pass={force_two_pass})")

    key = jax.random.PRNGKey(0)
    k1, k2, k3, k4, k5 = jax.random.split(key, 5)

    # Required toy shape: fused single-read path, tiny-C (VPU) sSE branch.
    run_case(2, 4, 16, 16, None, False, 1e-5, k1)
    # Same shape, forced two-pass streaming with multi-tile pooling + TC split.
    run_case(2, 4, 16, 16, 128, True, 1e-5, k2)
    # C >= 8: two-pass, MXU matvec with precision=HIGHEST, multi-tile grid.
    run_case(2, 64, 16, 16, 128, True, 1e-4, k3)
    # C >= 8: fused path, MXU matvec.
    run_case(2, 64, 16, 16, None, False, 1e-4, k4)
    # Irregular spatial size (HW=120 -> padded to 128), two-pass path.
    run_case(1, 16, 10, 12, None, True, 1e-4, k5)

    print("KERNEL_OK")
</pallas_src>

<mosaic_0001>
module attributes {stable_mosaic.version = 11 : i64} {
  func.func @_scse_fused_kernel(%arg0: i32, %arg1: memref<1x4x256xf32, #tpu.memory_space<vmem>>, %arg2: memref<4x2xf32, #tpu.memory_space<vmem>>, %arg3: memref<1x2xf32, #tpu.memory_space<vmem>>, %arg4: memref<4x2xf32, #tpu.memory_space<vmem>>, %arg5: memref<4x1xf32, #tpu.memory_space<vmem>>, %arg6: memref<4x1xf32, #tpu.memory_space<vmem>>, %arg7: memref<1x1xf32, #tpu.memory_space<vmem>>, %arg8: memref<1x4x256xf32, #tpu.memory_space<vmem>>) attributes {dimension_semantics = [#tpu.dimension_semantics<parallel>], iteration_bounds = array<i64: 2>, scalar_prefetch = 0 : i64, scratch_operands = 0 : i64, tpu.core_type = #tpu.core_type<tc>, window_params = [{transform_indices = @transform_0, window_bounds = array<i64: 1, 4, 256>}, {pipeline_mode = #tpu.pipeline_mode<synchronous>, transform_indices = @transform_1, window_bounds = array<i64: 4, 2>}, {pipeline_mode = #tpu.pipeline_mode<synchronous>, transform_indices = @transform_2, window_bounds = array<i64: 1, 2>}, {pipeline_mode = #tpu.pipeline_mode<synchronous>, transform_indices = @transform_3, window_bounds = array<i64: 4, 2>}, {pipeline_mode = #tpu.pipeline_mode<synchronous>, transform_indices = @transform_4, window_bounds = array<i64: 4, 1>}, {pipeline_mode = #tpu.pipeline_mode<synchronous>, transform_indices = @transform_5, window_bounds = array<i64: 4, 1>}, {pipeline_mode = #tpu.pipeline_mode<synchronous>, transform_indices = @transform_6, window_bounds = array<i64: 1, 1>}, {transform_indices = @transform_7, window_bounds = array<i64: 1, 4, 256>}]} {
    %c0 = arith.constant 0 : index
    %c0_0 = arith.constant 0 : index
    %c0_1 = arith.constant 0 : index
    %0 = vector.load %arg1[%c0, %c0_0, %c0_1] : memref<1x4x256xf32, #tpu.memory_space<vmem>>, vector<1x4x256xf32>
    %1 = vector.shape_cast %0 : vector<1x4x256xf32> to vector<4x256xf32>
    %cst = arith.constant dense<0.000000e+00> : vector<4xf32>
    %2 = vector.multi_reduction <add>, %1, %cst [1] : vector<4x256xf32> to vector<4xf32>
    %3 = vector.shape_cast %2 : vector<4xf32> to vector<4x1xf32>
    %cst_2 = arith.constant 3.906250e-03 : f32
    %4 = vector.broadcast %cst_2 : f32 to vector<4x1xf32>
    %5 = arith.mulf %3, %4 : vector<4x1xf32>
    %c0_3 = arith.constant 0 : index
    %c0_4 = arith.constant 0 : index
    %6 = vector.load %arg2[%c0_3, %c0_4] : memref<4x2xf32, #tpu.memory_space<vmem>>, vector<4x2xf32>
    %7 = vector.broadcast %5 : vector<4x1xf32> to vector<4x2xf32>
    %8 = arith.mulf %6, %7 : vector<4x2xf32>
    %cst_5 = arith.constant dense<0.000000e+00> : vector<2xf32>
    %9 = vector.multi_reduction <add>, %8, %cst_5 [0] : vector<4x2xf32> to vector<2xf32>
    %10 = vector.shape_cast %9 : vector<2xf32> to vector<1x2xf32>
    %c0_6 = arith.constant 0 : index
    %c0_7 = arith.constant 0 : index
    %11 = vector.load %arg3[%c0_6, %c0_7] : memref<1x2xf32, #tpu.memory_space<vmem>>, vector<1x2xf32>
    %12 = arith.addf %10, %11 : vector<1x2xf32>
    %cst_8 = arith.constant 0.000000e+00 : f32
    %cst_9 = arith.constant 6.000000e+00 : f32
    %13 = vector.broadcast %cst_8 : f32 to vector<1x2xf32>
    %14 = arith.maximumf %13, %12 : vector<1x2xf32>
    %15 = vector.broadcast %cst_9 : f32 to vector<1x2xf32>
    %16 = arith.minimumf %15, %14 : vector<1x2xf32>
    %c0_10 = arith.constant 0 : index
    %c0_11 = arith.constant 0 : index
    %17 = vector.load %arg4[%c0_10, %c0_11] : memref<4x2xf32, #tpu.memory_space<vmem>>, vector<4x2xf32>
    %18 = vector.broadcast %16 : vector<1x2xf32> to vector<4x2xf32>
    %19 = arith.mulf %17, %18 : vector<4x2xf32>
    %cst_12 = arith.constant dense<0.000000e+00> : vector<4xf32>
    %20 = vector.multi_reduction <add>, %19, %cst_12 [1] : vector<4x2xf32> to vector<4xf32>
    %21 = vector.shape_cast %20 : vector<4xf32> to vector<4x1xf32>
    %c0_13 = arith.constant 0 : index
    %c0_14 = arith.constant 0 : index
    %22 = vector.load %arg5[%c0_13, %c0_14] : memref<4x1xf32, #tpu.memory_space<vmem>>, vector<4x1xf32>
    %23 = arith.addf %21, %22 : vector<4x1xf32>
    %24 = arith.negf %23 : vector<4x1xf32>
    %25 = math.exp %24 : vector<4x1xf32>
    %cst_15 = arith.constant 1.000000e+00 : f32
    %26 = vector.broadcast %cst_15 : f32 to vector<4x1xf32>
    %27 = arith.addf %26, %25 : vector<4x1xf32>
    %28 = arith.divf %26, %27 : vector<4x1xf32>
    %c0_16 = arith.constant 0 : index
    %c0_17 = arith.constant 0 : index
    %29 = vector.load %arg6[%c0_16, %c0_17] : memref<4x1xf32, #tpu.memory_space<vmem>>, vector<4x1xf32>
    %30 = vector.broadcast %29 : vector<4x1xf32> to vector<4x256xf32>
    %31 = arith.mulf %30, %1 : vector<4x256xf32>
    %cst_18 = arith.constant dense<0.000000e+00> : vector<256xf32>
    %32 = vector.multi_reduction <add>, %31, %cst_18 [0] : vector<4x256xf32> to vector<256xf32>
    %33 = vector.shape_cast %32 : vector<256xf32> to vector<1x256xf32>
    %c0_19 = arith.constant 0 : index
    %c0_20 = arith.constant 0 : index
    %34 = vector.load %arg7[%c0_19, %c0_20] : memref<1x1xf32, #tpu.memory_space<vmem>>, vector<1x1xf32>
    %35 = vector.broadcast %34 : vector<1x1xf32> to vector<1x256xf32>
    %36 = arith.addf %33, %35 : vector<1x256xf32>
    %37 = arith.negf %36 : vector<1x256xf32>
    %38 = math.exp %37 : vector<1x256xf32>
    %cst_21 = arith.constant 1.000000e+00 : f32
    %39 = vector.broadcast %cst_21 : f32 to vector<1x256xf32>
    %40 = arith.addf %39, %38 : vector<1x256xf32>
    %41 = arith.divf %39, %40 : vector<1x256xf32>
    %42 = vector.broadcast %28 : vector<4x1xf32> to vector<4x256xf32>
    %43 = vector.broadcast %41 : vector<1x256xf32> to vector<4x256xf32>
    %44 = arith.addf %42, %43 : vector<4x256xf32>
    %45 = arith.mulf %1, %44 : vector<4x256xf32>
    %c0_22 = arith.constant 0 : index
    %c0_23 = arith.constant 0 : index
    %c0_24 = arith.constant 0 : index
    %46 = vector.load %arg8[%c0_22, %c0_23, %c0_24] : memref<1x4x256xf32, #tpu.memory_space<vmem>>, vector<1x4x256xf32>
    %47 = vector.shape_cast %46 : vector<1x4x256xf32> to vector<4x256xf32>
    %48 = vector.shape_cast %45 : vector<4x256xf32> to vector<1x4x256xf32>
    tpu.vector_store %arg8[%c0_22, %c0_23, %c0_24], %48 {strides = array<i32>} : memref<1x4x256xf32, #tpu.memory_space<vmem>>, vector<1x4x256xf32>,
    return
  }
  func.func @transform_0(%arg0: i32) -> (i32, i32, i32) {
    %c0_i32 = arith.constant 0 : i32
    %c0_i32_0 = arith.constant 0 : i32
    %c0_i32_1 = arith.constant 0 : i32
    return %arg0, %c0_i32, %c0_i32_0 : i32, i32, i32
  }
  func.func @transform_1(%arg0: i32) -> (i32, i32) {
    %c0_i32 = arith.constant 0 : i32
    %c0_i32_0 = arith.constant 0 : i32
    %c0_i32_1 = arith.constant 0 : i32
    return %c0_i32, %c0_i32_0 : i32, i32
  }
  func.func @transform_2(%arg0: i32) -> (i32, i32) {
    %c0_i32 = arith.constant 0 : i32
    %c0_i32_0 = arith.constant 0 : i32
    %c0_i32_1 = arith.constant 0 : i32
    return %c0_i32, %c0_i32_0 : i32, i32
  }
  func.func @transform_3(%arg0: i32) -> (i32, i32) {
    %c0_i32 = arith.constant 0 : i32
    %c0_i32_0 = arith.constant 0 : i32
    %c0_i32_1 = arith.constant 0 : i32
    return %c0_i32, %c0_i32_0 : i32, i32
  }
  func.func @transform_4(%arg0: i32) -> (i32, i32) {
    %c0_i32 = arith.constant 0 : i32
    %c0_i32_0 = arith.constant 0 : i32
    %c0_i32_1 = arith.constant 0 : i32
    return %c0_i32, %c0_i32_0 : i32, i32
  }
  func.func @transform_5(%arg0: i32) -> (i32, i32) {
    %c0_i32 = arith.constant 0 : i32
    %c0_i32_0 = arith.constant 0 : i32
    %c0_i32_1 = arith.constant 0 : i32
    return %c0_i32, %c0_i32_0 : i32, i32
  }
  func.func @transform_6(%arg0: i32) -> (i32, i32) {
    %c0_i32 = arith.constant 0 : i32
    %c0_i32_0 = arith.constant 0 : i32
    %c0_i32_1 = arith.constant 0 : i32
    return %c0_i32, %c0_i32_0 : i32, i32
  }
  func.func @transform_7(%arg0: i32) -> (i32, i32, i32) {
    %c0_i32 = arith.constant 0 : i32
    %c0_i32_0 = arith.constant 0 : i32
    %c0_i32_1 = arith.constant 0 : i32
    return %arg0, %c0_i32, %c0_i32_0 : i32, i32, i32
  }
}

</mosaic_0001>

<bundles_post_ra>
// kernel: scse_forward.1
= control target key start
LH: loop header
LB: loop body
LE: loop exit
PB: predicated region body
PF: predicated region fallthrough
CT: control target
= control target key end

     0   :  { %s529_s26 = smov 0   ;;  %s581_s0 = inlined_call_operand.vmem [shape: f32[2,4,256], index: 0, kind: input, shape index: {}]   ;;  %s582_s1 = inlined_call_operand.vmem [shape: f32[4,2], index: 1, kind: input, shape index: {}]   ;;  %s583_s2 = inlined_call_operand.vmem [shape: f32[1,2], index: 2, kind: input, shape index: {}]   ;;  %s584_s3 = inlined_call_operand.vmem [shape: f32[4,2], index: 3, kind: input, shape index: {}]   ;;  %s585_s4 = inlined_call_operand.vmem [shape: f32[4,1], index: 4, kind: input, shape index: {}]   ;;  %s586_s5 = inlined_call_operand.vmem [shape: f32[4,1], index: 5, kind: input, shape index: {}]   ;;  %s587_s6 = inlined_call_operand.<no memory space> [shape: f32[1,1], index: 6, kind: input, shape index: {}]   ;;  %s588_s7 = inlined_call_operand.vmem [shape: f32[2,4,256], index: 7, kind: output, shape index: {}]  }
   0x1   :  { %v12_v0 = vstv %s587_s6 }
   0x2   :  { %13 = vst [vmem:[#allocation2] sm:$0x1] %v12_v0 }
   0x3 LB: > { %s437_s27 = sadd.s32 4294967295, %s483_s26   ;;  %p441_p0 = scmp.ge.s32.totalorder %s483_s26, 1  ;;  %s483_s26 = sphi %s529_s26, %s19_s26  }
   0x4   : > { %p239_p1 = scmp.lt.s32.totalorder %s483_s26, 3 }
   0x6   : > { %p240_p2 = pnand %p441_p0, %p239_p1 }
   0x7   : > { %p271_p3 = scmp.lt.s32.totalorder (!%p240_p2), %s437_s27, 1  ;;  %vm285_vm0 = vcmask (!%p240_p2), 1043456   ;;  %v323_v6 = vld [vmem:[%s586_s5] sm:$0xf] (!%p240_p2)  ;;  %v485_v7 = vmov (!%p240_p2), 0   ;;  %vm294_vm1 = vcmask (!%p240_p2), 11264   ;;  %v307_v18 = vlaneseq (!%p240_p2) }
   0x8   : > { %243 = sbr.rel (%p240_p2) target bundleno = 499 (0x1f3), region = 48  ;;  %462 = vset.pattern.permute.xlu1 (!%p240_p2), %v485_v7  ;;  %463 = vset.pattern.permute.xlu0 (!%p240_p2), %v485_v7  ;;  %v292_v9 = vld [vmem:[%s582_s1] sm:$0xf] (!%p240_p2) }
   0x9   : > { %326 = vperm.xlu1 (!%p240_p2), %462, %v323_v6   ;;  %v345_v8 = vld [vmem:[#allocation2] sm:$0x1] (!%p240_p2)  ;;  %v308_v22 = vshrl.u32 (!%p240_p2), %v307_v18, 7 }
   0xa   : > { %v302_v20 = vld [vmem:[%s583_s2] sm:$0x1] (!%p240_p2) }
   0xb   : > { %v309_v25 = vsub.s32 (!%p240_p2), 0, %v308_v22  ;;  %v306_v27 = vld [vmem:[%s584_s3] sm:$0xf] (!%p240_p2) }
   0xc   : > { %v315_v31 = vld [vmem:[%s585_s4] sm:$0xf] (!%p240_p2) }
   0xd   : > { %348 = vperm.xlu1 (!%p240_p2), %462, %v345_v8  }
   0xf   : > { %s590_s27 = smov (!%p271_p3, %s437_s27), 1 }
  0x10   : > { %s451_s6 = sshll.u32 %s590_s27, 3 }
  0x11   : > { %s275_s30 = scalar_lea.vmem %s581_s0, %s451_s6  ;;  %s280_s20 = scalar_lea.vmem %s588_s7, %s451_s6 }
  0x12   : > { %v545_v1 = vld [vmem:[%s275_s30] sm:$0xff] }
  0x13   : > { %v283_v2 = vcombine.high %v545_v1, %v545_v1  ;;  %v286_v3 = vsel %vm285_vm0, %v545_v1, 0.0 }
  0x15   : > { %v287_v4 = vsel %vm285_vm0, %v283_v2, 0.0 }
  0x16   : > { %v288_v5 = vadd.f32 %v287_v4, %v286_v3 }
  0x18   : > { %289 = vadd.xlane.f32.xlu0 %v288_v5 }
  0x88   : > { %v327_v38 = vpop.permute.xlu1 %326 }
  0x89   : > { %v329_v39 = vmul.f32 %v327_v38, %v545_v1  ;;  %v330_v40 = vmul.f32 %v327_v38, %v283_v2 }
  0x8b   : > { %v331_v41 = vsel %vm285_vm0, %v329_v39, 0.0  ;;  %v338_v42 = vsel %vm285_vm0, %v330_v40, 0.0 }
  0x8c   : > { %v332_v43 = vrot.slane %v331_v41, 4  ;;  %v339_v44 = vrot.slane %v338_v42, 4  ;;  %v349_v52 = vpop.permute.xlu1 %348 }
  0x8d   : > { %v354_v55 = vrot.slane %v349_v52, %v309_v25 }
  0x8e   : > { %v333_v45 = vadd.f32 %v332_v43, %v331_v41  ;;  %v340_v46 = vadd.f32 %v339_v44, %v338_v42 }
  0x90   : > { %v334_v47 = vrot.slane %v333_v45, 2  ;;  %v341_v48 = vrot.slane %v340_v46, 2 }
  0x92   : > { %v335_v49 = vadd.f32 %v334_v47, %v333_v45  ;;  %v342_v50 = vadd.f32 %v341_v48, %v340_v46 }
  0x94   : > { %v336_v51 = vrot.slane %v335_v49, 1  ;;  %v343_v53 = vrot.slane %v342_v50, 1 }
  0x96   : > { %v337_v54 = vadd.f32 %v336_v51, %v335_v49  ;;  %v344_v56 = vadd.f32 %v343_v53, %v342_v50 }
  0x98   : > { %v355_v57 = vadd.f32 %v354_v55, %v337_v54  ;;  %v356_v58 = vadd.f32 %v354_v55, %v344_v56 }
  0x9a   : > { %v447_v59 = vmul.f32 -1.442695, %v355_v57  ;;  %v448_v60 = vmul.f32 -1.442695, %v356_v58 }
  0xa5   : > { %v290_v10 = vpop.xlane.xlu0 %289 }
  0xa6   : > { %v291_v11 = vmul.f32 0.00390625, %v290_v10 }
  0xa8   : > { %v293_v12 = vmul.f32 %v292_v9, %v291_v11 }
  0xaa   : > { %v295_v13 = vsel %vm294_vm1, %v293_v12, 0.0 }
  0xab   : > { %v296_v14 = vrot.slane %v295_v13, 4 }
  0xad   : > { %v297_v15 = vadd.f32 %v296_v14, %v295_v13 }
  0xaf   : > { %v298_v16 = vrot.slane %v297_v15, 2 }
  0xb1   : > { %v299_v17 = vadd.f32 %v298_v16, %v297_v15 }
  0xb3   : > { %v300_v19 = vrot.slane %v299_v17, 1 }
  0xb5   : > { %v301_v21 = vadd.f32 %v300_v19, %v299_v17 }
  0xb7   : > { %v303_v23 = vadd.f32 %v302_v20, %v301_v21 }
  0xb9   : > { %v304_v24 = vmax.f32 %v303_v23, 0.0 }
  0xbb   : > { %v305_v26 = vmin.f32 %v304_v24, 6.0 }
  0xbd   : > { %v310_v28 = vrot.slane %v305_v26, %v309_v25 }
  0xbf   : > { %v311_v29 = vmul.f32 %v310_v28, %v306_v27 }
  0xc1   : > { %v312_v30 = vsel %vm294_vm1, %v311_v29, 0.0 }
  0xc2   : > { %313 = vadd.xlane.f32.xlu0 %v312_v30 }
 0x14f   : > { %v314_v32 = vpop.xlane.xlu0 %313 }
 0x150   : > { %v316_v33 = vadd.f32 %v315_v31, %v314_v32 }
 0x152   : > { %v446_v34 = vmul.f32 -1.442695, %v316_v33 }
 0x154   : > { %465 = vpow2.f32 %v446_v34 }
 0x15e   : > { %v466_v35 = vpop.eup %465 }
 0x15f   : > { %v320_v36 = vadd.f32 1.0, %v466_v35 }
 0x161   : > { %467 = vrcp.f32 %v320_v36 }
 0x162   : > { %469 = vpow2.f32 %v447_v59 }
 0x163   : > { %471 = vpow2.f32 %v448_v60 }
 0x16b   : > { %v468_v37 = vpop.eup %467 }
 0x16c   : > { %371 = vperm.xlu0 %463, %v468_v37   ;;  %v470_v61 = vpop.eup %469 }
 0x16d   : > { %v472_v62 = vpop.eup %471  ;;  %v363_v63 = vadd.f32 1.0, %v470_v61 }
 0x16e   : > { %v364_v0 = vadd.f32 1.0, %v472_v62 }
 0x16f   : > { %473 = vrcp.f32 %v363_v63 }
 0x170   : > { %475 = vrcp.f32 %v364_v0 }
 0x179   : > { %v474_v2 = vpop.eup %473 }
 0x17a   : > { %v476_v3 = vpop.eup %475 }
 0x1eb   : > { %v372_v4 = vpop.permute.xlu0 %371 }
 0x1ec   : > { %v374_v5 = vadd.f32 %v474_v2, %v372_v4  ;;  %v375_v6 = vadd.f32 %v476_v3, %v372_v4 }
 0x1ee   : > { %v378_v7 = vcombine.low %v374_v5, %v375_v6 }
 0x1f0   : > { %v380_v8 = vmul.f32 %v378_v7, %v545_v1 }
 0x1f2   : > { %381 = vst [vmem:[%s280_s20] sm:$0xff] %v380_v8 }
 0x1f3 PF: > { %s19_s26 = sadd.s32 1, %s483_s26  }
 0x1f4   : > { %p16_p4 = scmp.ge.s32.totalorder %s19_s26, 4  }
 0x1f6   :  { %18 = sbr.rel (!%p16_p4) target bundleno = 3 (0x3), region = 78 }

</bundles_post_ra>
